<compile_context>
chip_gen: v7x
topology: tpu7x:2x2x1
jax: 0.10.0
libtpu: 0.0.40
codegen_flags: <defaults>
</compile_context>

<pallas_src>
import jax
import jax.numpy as jnp
from jax.experimental import pallas as pl
from jax.experimental.pallas import tpu as pltpu

N_IN, N_H, N_OUT = 4, 24, 2

_HIGHEST = jax.lax.Precision.HIGHEST

# Packed parameter layout inside a single (24, 128) f32 buffer:
#   cols  0:24          fc2.weight  (24, 24)   (torch (out, in) layout)
#   cols 24:28          fc1.weight  (24, 4)
#   col  28             fc1.bias    (24,)
#   col  29             fc2.bias    (24,)
#   rows 0:2, cols 32:56 fc3.weight (2, 24)
#   rows 0:2, col  56    fc3.bias   (2,)


def dqn_kernel(x_ref, p_ref, o_ref):
    x = x_ref[...]                        # (4, TB) -- batch on the lane axis
    w2 = p_ref[:, 0:24]                   # (24, 24)
    w1 = p_ref[:, 24:28]                  # (24, 4)
    b1 = p_ref[:, 28:29]                  # (24, 1)
    b2 = p_ref[:, 29:30]                  # (24, 1)
    w3 = p_ref[0:2, 32:56]                # (2, 24)
    b3 = p_ref[0:2, 56:57]                # (2, 1)

    # fc1: (24,4) @ (4,TB) on the MXU (MXU is otherwise idle; frees the VALU slot).
    h1 = jnp.dot(w1, x, preferred_element_type=jnp.float32, precision=_HIGHEST)
    h1 = jnp.maximum(h1 + b1, 0.0)        # (24, TB) bias + ReLU on the VPU

    # fc2: (24,24) @ (24,TB) on the MXU.
    h2 = jnp.dot(w2, h1, preferred_element_type=jnp.float32, precision=_HIGHEST)
    h2 = jnp.maximum(h2 + b2, 0.0)        # (24, TB)

    # fc3: (2,24) @ (24,TB) on the MXU; one lane-dense (2, TB) store.
    o_ref[...] = (
        jnp.dot(w3, h2, preferred_element_type=jnp.float32, precision=_HIGHEST) + b3
    )


def pack_params(params):
    """Pack torch-layout params into one (24, 128) VMEM-resident f32 buffer."""
    w1, b1, w2, b2, w3, b3 = params       # (24,4),(24,),(24,24),(24,),(2,24),(2,)
    p = jnp.zeros((N_H, 128), jnp.float32)
    p = p.at[:, 0:24].set(w2)
    p = p.at[:, 24:28].set(w1)
    p = p.at[:, 28].set(b1)
    p = p.at[:, 29].set(b2)
    p = p.at[0:2, 32:56].set(w3)
    p = p.at[0:2, 56].set(b3)
    return p


def _round_up(x, m):
    return ((x + m - 1) // m) * m


def dqn_forward(x, params, block_b=8192):
    """x: (B, 4) float32 states.  Returns (B, 2) Q-values (matches torch DQN.forward)."""
    B = x.shape[0]
    p = pack_params(params)

    block_b = max(128, (block_b // 128) * 128)      # keep the tile lane-aligned
    b_pad = _round_up(max(B, 128), 128)             # lane-align the batch

    # Adaptive tile: cap at block_b, keep padding waste <128 lanes per tile, and
    # give megacore (v7x) at least 2 grid steps whenever there is enough batch.
    n_tiles = pl.cdiv(b_pad, block_b)
    if b_pad >= 256:
        n_tiles = max(n_tiles, 2)
    tb = _round_up(pl.cdiv(b_pad, n_tiles), 128)
    grid_n = pl.cdiv(b_pad, tb)
    b_pad = grid_n * tb

    # Feature-major (4, b_pad) input: jnp.pad(x.T, ...) fuses pad+transpose into a
    # single XLA pass (no zeros + dynamic_update_slice materialization).
    xt = jnp.pad(x.T.astype(jnp.float32), ((0, 0), (0, b_pad - B)))

    out_t = pl.pallas_call(
        dqn_kernel,
        out_shape=jax.ShapeDtypeStruct((N_OUT, b_pad), jnp.float32),
        grid_spec=pltpu.PrefetchScalarGridSpec(
            num_scalar_prefetch=0,
            grid=(grid_n,),
            in_specs=[
                pl.BlockSpec((N_IN, tb), lambda i: (0, i)),    # stream x^T tiles
                pl.BlockSpec((N_H, 128), lambda i: (0, 0)),    # params stay resident
            ],
            out_specs=pl.BlockSpec((N_OUT, tb), lambda i: (0, i)),
        ),
        compiler_params=pltpu.CompilerParams(
            dimension_semantics=("parallel",),                 # megacore on v7x
        ),
    )(xt, p)
    # Padded columns carry relu(b1)-propagated garbage; slice them off here.
    return out_t[:, :B].T                                      # back to (B, 2)


def init_params(key):
    # PyTorch nn.Linear default init: U(-1/sqrt(fan_in), 1/sqrt(fan_in)),
    # weights stored (out_features, in_features), bias (out_features,).
    def linear(key, fan_in, fan_out):
        kw, kb = jax.random.split(key)
        bound = 1.0 / jnp.sqrt(jnp.float32(fan_in))
        w = jax.random.uniform(kw, (fan_out, fan_in), jnp.float32, -bound, bound)
        b = jax.random.uniform(kb, (fan_out,), jnp.float32, -bound, bound)
        return w, b

    k1, k2, k3 = jax.random.split(key, 3)
    w1, b1 = linear(k1, N_IN, N_H)
    w2, b2 = linear(k2, N_H, N_H)
    w3, b3 = linear(k3, N_H, N_OUT)
    return w1, b1, w2, b2, w3, b3


def reference_forward(x, params):
    w1, b1, w2, b2, w3, b3 = params
    h1 = jnp.maximum(x @ w1.T + b1, 0.0)
    h2 = jnp.maximum(h1 @ w2.T + b2, 0.0)
    return h2 @ w3.T + b3


if __name__ == "__main__":
    key = jax.random.PRNGKey(0)
    kp, kx = jax.random.split(key)
    params = init_params(kp)

    B = 8  # small batch of CartPole-like 4-dim states
    x = jax.random.normal(kx, (B, 4), jnp.float32)

    out = dqn_forward(x, params)
    out = jax.block_until_ready(out)

    ref = reference_forward(x, params)
    assert out.shape == (B, 2)
    assert jnp.allclose(out, ref, atol=1e-4, rtol=1e-4)

    print("KERNEL_OK")
</pallas_src>

<mosaic_0001>
module attributes {stable_mosaic.version = 11 : i64} {
  func.func @dqn_kernel(%arg0: i32, %arg1: memref<4x128xf32, #tpu.memory_space<vmem>>, %arg2: memref<24x128xf32, #tpu.memory_space<vmem>>, %arg3: memref<2x128xf32, #tpu.memory_space<vmem>>) attributes {dimension_semantics = [#tpu.dimension_semantics<parallel>], iteration_bounds = array<i64: 1>, scalar_prefetch = 0 : i64, scratch_operands = 0 : i64, tpu.core_type = #tpu.core_type<tc>, window_params = [{transform_indices = @transform_0, window_bounds = array<i64: 4, 128>}, {pipeline_mode = #tpu.pipeline_mode<synchronous>, transform_indices = @transform_1, window_bounds = array<i64: 24, 128>}, {transform_indices = @transform_2, window_bounds = array<i64: 2, 128>}]} {
    %c0 = arith.constant 0 : index
    %c0_0 = arith.constant 0 : index
    %0 = vector.load %arg1[%c0, %c0_0] : memref<4x128xf32, #tpu.memory_space<vmem>>, vector<4x128xf32>
    %c0_1 = arith.constant 0 : index
    %c0_2 = arith.constant 0 : index
    %1 = vector.load %arg2[%c0_1, %c0_2] : memref<24x128xf32, #tpu.memory_space<vmem>>, vector<24x24xf32>
    %c0_3 = arith.constant 0 : index
    %c24 = arith.constant 24 : index
    %2 = vector.load %arg2[%c0_3, %c24] : memref<24x128xf32, #tpu.memory_space<vmem>>, vector<24x4xf32>
    %c0_4 = arith.constant 0 : index
    %c28 = arith.constant 28 : index
    %3 = vector.load %arg2[%c0_4, %c28] : memref<24x128xf32, #tpu.memory_space<vmem>>, vector<24x1xf32>
    %c0_5 = arith.constant 0 : index
    %c29 = arith.constant 29 : index
    %4 = vector.load %arg2[%c0_5, %c29] : memref<24x128xf32, #tpu.memory_space<vmem>>, vector<24x1xf32>
    %c0_6 = arith.constant 0 : index
    %c32 = arith.constant 32 : index
    %5 = vector.load %arg2[%c0_6, %c32] : memref<24x128xf32, #tpu.memory_space<vmem>>, vector<2x24xf32>
    %c0_7 = arith.constant 0 : index
    %c56 = arith.constant 56 : index
    %6 = vector.load %arg2[%c0_7, %c56] : memref<24x128xf32, #tpu.memory_space<vmem>>, vector<2x1xf32>
    %cst = arith.constant dense<0.000000e+00> : vector<24x128xf32>
    %7 = tpu.matmul %2, %0, %cst {dimension_numbers = #tpu.dot_dimension_numbers<[1], [0], [0], [1], [0, 0, 1, 1], [], []>, precision = #tpu.contract_precision<fp32>} : vector<24x4xf32>, vector<4x128xf32>, vector<24x128xf32> -> vector<24x128xf32>
    %8 = vector.broadcast %3 : vector<24x1xf32> to vector<24x128xf32>
    %9 = arith.addf %7, %8 : vector<24x128xf32>
    %cst_8 = arith.constant 0.000000e+00 : f32
    %10 = vector.broadcast %cst_8 : f32 to vector<24x128xf32>
    %11 = arith.maximumf %9, %10 : vector<24x128xf32>
    %cst_9 = arith.constant dense<0.000000e+00> : vector<24x128xf32>
    %12 = tpu.matmul %1, %11, %cst_9 {dimension_numbers = #tpu.dot_dimension_numbers<[1], [0], [0], [1], [0, 0, 1, 1], [], []>, precision = #tpu.contract_precision<fp32>} : vector<24x24xf32>, vector<24x128xf32>, vector<24x128xf32> -> vector<24x128xf32>
    %13 = vector.broadcast %4 : vector<24x1xf32> to vector<24x128xf32>
    %14 = arith.addf %12, %13 : vector<24x128xf32>
    %cst_10 = arith.constant 0.000000e+00 : f32
    %15 = vector.broadcast %cst_10 : f32 to vector<24x128xf32>
    %16 = arith.maximumf %14, %15 : vector<24x128xf32>
    %cst_11 = arith.constant dense<0.000000e+00> : vector<2x128xf32>
    %17 = tpu.matmul %5, %16, %cst_11 {dimension_numbers = #tpu.dot_dimension_numbers<[1], [0], [0], [1], [0, 0, 1, 1], [], []>, precision = #tpu.contract_precision<fp32>} : vector<2x24xf32>, vector<24x128xf32>, vector<2x128xf32> -> vector<2x128xf32>
    %18 = vector.broadcast %6 : vector<2x1xf32> to vector<2x128xf32>
    %19 = arith.addf %17, %18 : vector<2x128xf32>
    %c0_12 = arith.constant 0 : index
    %c0_13 = arith.constant 0 : index
    %20 = vector.load %arg3[%c0_12, %c0_13] : memref<2x128xf32, #tpu.memory_space<vmem>>, vector<2x128xf32>
    tpu.vector_store %arg3[%c0_12, %c0_13], %19 {strides = array<i32>} : memref<2x128xf32, #tpu.memory_space<vmem>>, vector<2x128xf32>,
    return
  }
  func.func @transform_0(%arg0: i32) -> (i32, i32) {
    %c0_i32 = arith.constant 0 : i32
    %c0_i32_0 = arith.constant 0 : i32
    return %c0_i32, %arg0 : i32, i32
  }
  func.func @transform_1(%arg0: i32) -> (i32, i32) {
    %c0_i32 = arith.constant 0 : i32
    %c0_i32_0 = arith.constant 0 : i32
    %c0_i32_1 = arith.constant 0 : i32
    return %c0_i32, %c0_i32_0 : i32, i32
  }
  func.func @transform_2(%arg0: i32) -> (i32, i32) {
    %c0_i32 = arith.constant 0 : i32
    %c0_i32_0 = arith.constant 0 : i32
    return %c0_i32, %arg0 : i32, i32
  }
}

</mosaic_0001>

<bundles_post_ra>
// kernel: tpu_custom_call.1
= control target key start
LH: loop header
LB: loop body
LE: loop exit
PB: predicated region body
PF: predicated region fallthrough
CT: control target
= control target key end

     0   :  { %7 = vsyncpa [#allocation3], 0  ;;  %s2452_s0 = inlined_call_operand.hbm [shape: f32[4,128], index: 0, kind: input, shape index: {}]   ;;  %s2453_s1 = inlined_call_operand.hbm [shape: f32[24,128], index: 1, kind: input, shape index: {}]   ;;  %s2454_s2 = inlined_call_operand.hbm [shape: f32[2,128], index: 2, kind: output, shape index: {}]  }
   0x1   :  { %8 = vsyncpa [#allocation6], 0 }
   0x2   :  { %9 = vsyncpa [#allocation4], 0  ;;  %s2181_s9 = smov [#allocation2]   ;;  %s2182_s11 = smov [#allocation5]  }
   0x3   :  { %s16_s10 = sshll.u32 %s2181_s9, 4  ;;  %s25_s12 = sshll.u32 %s2182_s11, 4  ;;  %s17_s10 = int_to_ptr.vmem [resolvable:$true] %s16_s10  ;;  %s2209_s12 = int_to_ptr.vmem [resolvable:$true] %s25_s12 }
   0x4   :  { %s2109_s15 = scalar_lea.hbm %s2452_s0, 64 }
   0x5   :  { %p2110_p0 = scmp.ne.s32.totalorder %s2452_s0, %s2109_s15  ;;  %p2113_p1 = scmp.lt.u32.totalorder %s2109_s15, %s2452_s0 }
   0x7   :  { %p2115_p2 = pnand %p2113_p1, %p2110_p0 }
   0x9   :  { %2118 = shalt.err (!%p2115_p2)
}
   0xa   :  { %s2119_s20 = scalar_lea.vmem %s17_s10, 64  ;;  %p2124_p4 = scmp.lt.s32.totalorder %s17_s10, %s17_s10 }
   0xb   :  { %p2120_p3 = scmp.ne.s32.totalorder %s17_s10, %s2119_s20  ;;  %p2125_p5 = scmp.lt.s32.totalorder %s2119_s20, %s2119_s20 }
   0xd   :  { %p2126_p6 = por %p2125_p5, %p2124_p4 }
   0xf   :  { %p2127_p7 = pnand %p2126_p6, %p2120_p3 }
  0x11   :  { %2130 = shalt.err (!%p2127_p7)
}
  0x12   :  { %19 = dma.hbm_to_vmem [thread:$0]  %s2452_s0, 64, %s17_s10, [#allocation3]  }
  0x13   :  { %s2131_s25 = scalar_lea.hbm %s2453_s1, 384 }
  0x14   :  { %p2132_p8 = scmp.ne.s32.totalorder %s2453_s1, %s2131_s25  ;;  %p2135_p9 = scmp.lt.u32.totalorder %s2131_s25, %s2453_s1 }
  0x16   :  { %p2137_p10 = pnand %p2135_p9, %p2132_p8 }
  0x18   :  { %2140 = shalt.err (!%p2137_p10)
}
  0x19   :  { %s2141_s30 = scalar_lea.vmem %s2209_s12, 384  ;;  %p2146_p12 = scmp.lt.s32.totalorder %s2209_s12, %s2209_s12 }
  0x1a   :  { %p2142_p11 = scmp.ne.s32.totalorder %s2209_s12, %s2141_s30  ;;  %p2147_p13 = scmp.lt.s32.totalorder %s2141_s30, %s2141_s30 }
  0x1c   :  { %p2148_p0 = por %p2147_p13, %p2146_p12 }
  0x1e   :  { %p2149_p1 = pnand %p2148_p0, %p2142_p11 }
  0x20   :  { %2152 = shalt.err (!%p2149_p1)
}
  0x21   :  { %s2183_s0 = smov 128   ;;  %s2184_s3 = smov 8  }
  0x22   :  { %31 = dma.hbm_to_vmem [thread:$0]  %s2453_s1, 384, %s2209_s12, [#allocation6], %s2183_s0, %s2183_s0, %s2184_s3  }
  0x23   :  { %2175 = dma.done.wait [#allocation3], 64  }
  0x24   :  { %2176 = vsyncadd [#allocation3], 4294967232 }
  0x25   :  { %2177 = dma.done.wait [#allocation6], 384  }
  0x26   :  { %2178 = vsyncadd [#allocation6], 4294966912  ;;  %v2185_v0 = vmov 0.0   ;;  %vm2186_vm0 = vmmov 0   ;;  %vm71_vm1 = vcmask 1043456   ;;  %v2246_v1 = vld [vmem:[#allocation5] sm:$0xff] }
  0x27   :  { %1783 = vmatprep.subr.mxu0 %v2185_v0  ;;  %1772 = vmatprep.subr.mxu1 %v2185_v0  ;;  %v2248_v2 = vld [vmem:[#allocation5 + $0x10] sm:$0xff]  ;;  %s2187_s1 = smov 104   ;;  %v38_v3 = vld [vmem:[#allocation2] sm:$0xf]  ;;  %v2252_v4 = vld [vmem:[#allocation5 + $0x8] sm:$0xff]  ;;  %v2188_v11 = vmov 28  }
  0x28   :  { %1785 = vmatprep.mubr.msk.f32.mxu0 %vm2186_vm0, %v2185_v0  ;;  %1774 = vmatprep.mubr.msk.f32.mxu1 %vm2186_vm0, %v2185_v0  ;;  %v73_v5 = vsel %vm71_vm1, %v38_v3, 0  ;;  %vm64_vm2 = vcmask 31744   ;;  %v2189_v33 = vmov 0.0|0.0   ;;  %v2190_v34 = vmov 29   ;;  %v2309_v39 = vld [vmem:[#allocation5] sm:$0x3] }
  0x29   :  { %58 = vrot.lane.b32.xlu0 %v2246_v1, %s2187_s1  ;;  %62 = vrot.lane.b32.xlu1 %v2248_v2, %s2187_s1  ;;  %v2254_v6 = vand.u32 4294901760, %v73_v5  ;;  %s2191_s6 = smov 96   ;;  %vm622_vm3 = vcmask 195584   ;;  %s2193_s7 = smov [#allocation7]  }
  0x2a   :  { %2104 = vset.pattern.permute.xlu1 %v2188_v11  ;;  %2105 = vset.pattern.permute.xlu0 %v2188_v11  ;;  %v623_v42 = vsel %vm622_vm3, %v2246_v1, 0  ;;  %v625_v45 = vsel %vm622_vm3, %v2252_v4, 0  ;;  %v627_v53 = vsel %vm622_vm3, %v2248_v2, 0  ;;  %s1678_s8 = sshll.u32 %s2193_s7, 4  ;;  %s1679_s8 = int_to_ptr.vmem [resolvable:$true] %s1678_s8 }
  0x2b   :  { %v173_v7 = vsub.f32 %v73_v5, %v2254_v6  ;;  %1773 = vmatpush3.msra.mxu1 %v2254_v6  ;;  %v2314_v44 = vand.u32 4294901760, %v623_v42  ;;  %v2321_v52 = vand.u32 4294901760, %v625_v45  ;;  %v2326_v62 = vand.u32 4294901760, %v627_v53  ;;  %s2153_s9 = scalar_lea.vmem %s1679_s8, 32  ;;  %p2158_p3 = scmp.lt.s32.totalorder %s1679_s8, %s1679_s8 }
  0x2c   :  { %1982 = vmatprep.subr.bf16.mxu1 %v2189_v33  ;;  %p2154_p2 = scmp.ne.s32.totalorder %s1679_s8, %s2153_s9  ;;  %p2159_p4 = scmp.lt.s32.totalorder %s2153_s9, %s2153_s9 }
  0x2d   :  { %60 = vrot.lane.b32.xlu0 %v2252_v4, %s2187_s1  ;;  %v174_v8 = vand.u32 4294901760, %v173_v7  ;;  %45 = vperm.xlu1 %2104, %v2246_v1   ;;  %v2319_v51 = vsub.f32 %v623_v42, %v2314_v44  ;;  %v2329_v63 = vsub.f32 %v625_v45, %v2321_v52 }
  0x2e   :  { %p2160_p5 = por %p2159_p4, %p2158_p3 }
  0x2f   :  { %v175_v9 = vsub.f32 %v173_v7, %v174_v8  ;;  %v699_v61 = vand.u32 4294901760, %v2319_v51  ;;  %v709_v11 = vand.u32 4294901760, %v2329_v63 }
  0x30   :  { %p2161_p6 = pnand %p2160_p5, %p2154_p2 }
  0x31   :  { %v176_v10 = vand.u32 4294901760, %v175_v9  ;;  %50 = vperm.xlu0 %2105, %v2252_v4   ;;  %55 = vperm.xlu1 %2104, %v2248_v2   ;;  %v2332_v9 = vsub.f32 %v627_v53, %v2326_v62 }
  0x33   :  { %1784 = vmatpush3.msra.mxu0 %v176_v10  ;;  %v700_v10 = vsub.f32 %v2319_v51, %v699_v61 }
  0x34   :  { %1794 = vmatprep.subr.mxu0 %v2185_v0 }
  0x35   :  { %2106 = vset.pattern.permute.xlu1 %v2190_v34  ;;  %2107 = vset.pattern.permute.xlu0 %v2190_v34 }
  0x36   :  { %611 = vperm.xlu1 %2106, %v2246_v1   ;;  %615 = vperm.xlu0 %2107, %v2252_v4  }
  0x3a   :  { %619 = vperm.xlu1 %2106, %v2248_v2  }
  0x3e   :  { %1195 = vrot.lane.b32.xlu1 %v2309_v39, %s2191_s6 }
  0x9b   :  { %v59_v12 = vpop.permute.xlu0 %58  ;;  %v63_v13 = vpop.permute.xlu1 %62 }
  0x9c   :  { %v65_v14 = vsel %vm64_vm2, %v59_v12, 0  ;;  %v69_v15 = vsel %vm64_vm2, %v63_v13, 0 }
  0x9d   :  { %v141_v16 = vand.u32 4294901760, %v65_v14  ;;  %v161_v17 = vand.u32 4294901760, %v69_v15 }
  0x9f   :  { %v142_v18 = vsub.f32 %v65_v14, %v141_v16  ;;  %v61_v19 = vpop.permute.xlu0 %60  ;;  %1786 = vmatmul.mubr.f32.vlgmr.msra.gmra.mrb[0].mxu0 %v141_v16  ;;  %v162_v22 = vsub.f32 %v69_v15, %v161_v17 }
  0xa0   :  { %v67_v20 = vsel %vm64_vm2, %v61_v19, 0  ;;  %1788 = vmatprep.mubr.msk.f32.mxu0 %vm2186_vm0, %v2185_v0  ;;  %1795 = vmatpush3.msra.mxu0 %v173_v7  ;;  %v701_v19 = vand.u32 4294901760, %v700_v10 }
  0xa1   :  { %v143_v21 = vand.u32 4294901760, %v142_v18  ;;  %v151_v23 = vand.u32 4294901760, %v67_v20  ;;  %1805 = vmatprep.subr.mxu0 %v2185_v0  ;;  %v163_v26 = vand.u32 4294901760, %v162_v22 }
  0xa3   :  { %v152_v24 = vsub.f32 %v67_v20, %v151_v23  ;;  %1789 = vmatmul.mubr.f32.gmra.mrb[2].mxu0 %v151_v23  ;;  %v144_v25 = vsub.f32 %v142_v18, %v143_v21  ;;  %v164_v31 = vsub.f32 %v162_v22, %v163_v26  ;;  %v710_v20 = vsub.f32 %v2329_v63, %v709_v11 }
  0xa4   :  { %1791 = vmatprep.mubr.msk.f32.mxu0 %vm2186_vm0, %v2185_v0 }
  0xa5   :  { %v153_v27 = vand.u32 4294901760, %v152_v24  ;;  %v145_v28 = vand.u32 4294901760, %v144_v25  ;;  %v165_v32 = vand.u32 4294901760, %v164_v31 }
  0xa7   :  { %1775 = vmatmul.mubr.f32.vlgmr.msra.gmra.mrb[0].mxu1 %v145_v28  ;;  %1792 = vmatmul.mubr.f32.gmra.mrb[4].mxu0 %v161_v17  ;;  %v154_v29 = vsub.f32 %v152_v24, %v153_v27  ;;  %v711_v28 = vand.u32 4294901760, %v710_v20 }
  0xa8   :  { %1777 = vmatprep.mubr.msk.f32.mxu1 %vm2186_vm0, %v2185_v0  ;;  %1796 = vmatprep.mubr.msk.f32.mxu0 %vm2186_vm0, %v2185_v0 }
  0xa9   :  { %v155_v30 = vand.u32 4294901760, %v154_v29 }
  0xab   :  { %1778 = vmatmul.mubr.f32.gmra.mrb[2].mxu1 %v155_v30  ;;  %1797 = vmatmul.mubr.f32.vlgmr.msra.gmra.mrb[0].mxu0 %v142_v18 }
  0xac   :  { %1780 = vmatprep.mubr.msk.f32.mxu1 %vm2186_vm0, %v2185_v0  ;;  %1799 = vmatprep.mubr.msk.f32.mxu0 %vm2186_vm0, %v2185_v0  ;;  %v46_v43 = vpop.permute.xlu1 %45 }
  0xad   :  { %1806 = vmatpush3.msra.mxu0 %v2254_v6 }
  0xae   :  { %1816 = vmatprep.subr.mxu0 %v2185_v0 }
  0xaf   :  { %1781 = vmatmul.mubr.f32.gmra.mrb[4].mxu1 %v165_v32  ;;  %1800 = vmatmul.mubr.f32.gmra.mrb[2].mxu0 %v152_v24 }
  0xb0   :  { %1802 = vmatprep.mubr.msk.f32.mxu0 %vm2186_vm0, %v2185_v0  ;;  %1844 = vmatprep.mubr.msk.f32.mxu1 %vm2186_vm0, %v2185_v0  ;;  %v51_v47 = vpop.permute.xlu0 %50  ;;  %v56_v56 = vpop.permute.xlu1 %55 }
  0xb3   :  { %1803 = vmatmul.mubr.f32.gmra.mrb[4].mxu0 %v162_v22 }
  0xb4   :  { %1807 = vmatprep.mubr.msk.f32.mxu0 %vm2186_vm0, %v2185_v0 }
  0xb5   :  { %v616_v45 = vpop.permute.xlu0 %615 }
  0xb7   :  { %1808 = vmatmul.mubr.f32.vlgmr.msra.gmra.mrb[0].mxu0 %v143_v21  ;;  %v719_v21 = vand.u32 4294901760, %v2332_v9 }
  0xb8   :  { %1810 = vmatprep.mubr.msk.f32.mxu0 %vm2186_vm0, %v2185_v0  ;;  %1817 = vmatpush3.msra.mxu0 %v174_v8 }
  0xb9   :  { %1827 = vmatprep.subr.mxu0 %v2185_v0  ;;  %v720_v29 = vsub.f32 %v2332_v9, %v719_v21 }
  0xbb   :  { %1811 = vmatmul.mubr.f32.gmra.mrb[2].mxu0 %v153_v27  ;;  %v721_v32 = vand.u32 4294901760, %v720_v29 }
  0xbc   :  { %1813 = vmatprep.mubr.msk.f32.mxu0 %vm2186_vm0, %v2185_v0 }
  0xbf   :  { %1814 = vmatmul.mubr.f32.gmra.mrb[4].mxu0 %v163_v26 }
  0xc0   :  { %1818 = vmatprep.mubr.msk.f32.mxu0 %vm2186_vm0, %v2185_v0 }
  0xc3   :  { %1819 = vmatmul.mubr.f32.vlgmr.msra.gmra.mrb[0].mxu0 %v141_v16 }
  0xc4   :  { %1821 = vmatprep.mubr.msk.f32.mxu0 %vm2186_vm0, %v2185_v0  ;;  %1828 = vmatpush3.msra.mxu0 %v2254_v6 }
  0xc5   :  { %2003 = vmatprep.subr.bf16.mxu0 %v2189_v33 }
  0xc7   :  { %1822 = vmatmul.mubr.f32.gmra.mrb[2].mxu0 %v151_v23 }
  0xc8   :  { %1824 = vmatprep.mubr.msk.f32.mxu0 %vm2186_vm0, %v2185_v0 }
  0xcb   :  { %1825 = vmatmul.mubr.f32.gmra.mrb[4].mxu0 %v161_v17 }
  0xcc   :  { %1829 = vmatprep.mubr.msk.f32.mxu0 %vm2186_vm0, %v2185_v0 }
  0xcf   :  { %1830 = vmatmul.mubr.f32.vlgmr.msra.gmra.mrb[0].mxu0 %v141_v16 }
  0xd0   :  { %1832 = vmatprep.mubr.msk.f32.mxu0 %vm2186_vm0, %v2185_v0 }
  0xd3   :  { %1833 = vmatmul.mubr.f32.gmra.mrb[2].mxu0 %v151_v23 }
  0xd4   :  { %1835 = vmatprep.mubr.msk.f32.mxu0 %vm2186_vm0, %v2185_v0 }
  0xd7   :  { %1836 = vmatmul.mubr.f32.gmra.mrb[4].mxu0 %v161_v17 }
  0xd8   :  { %1943 = vmatprep.mubr.msk.f32.mxu0 %vm2186_vm0, %v2185_v0 }
 0x17a   :  { %v147_v35 = vpop.f32.mrb[0].mxu1 }
 0x17b   :  { %v1776_v36 = vpop.f32.mrb[1].mxu1  ;;  %v148_v46 = vadd.f32 %v147_v35, %v46_v43  ;;  %v2192_v35 = vmov 56  }
 0x17c   :  { %2108 = vset.pattern.permute.xlu0 %v2192_v35  ;;  %v612_v36 = vpop.permute.xlu1 %611 }
 0x17d   :  { %1192 = vperm.xlu0 %2108, %v2309_v39  }
 0x17e   :  { %v157_v37 = vpop.f32.mrb[2].mxu1 }
 0x17f   :  { %v1779_v38 = vpop.f32.mrb[3].mxu1  ;;  %v158_v54 = vadd.f32 %v157_v37, %v51_v47 }
 0x180   :  { %v620_v37 = vpop.permute.xlu1 %619 }
 0x182   :  { %v167_v40 = vpop.f32.mrb[4].mxu1 }
 0x183   :  { %v1782_v41 = vpop.f32.mrb[5].mxu1  ;;  %v168_v1 = vadd.f32 %v167_v40, %v56_v56 }
 0x184   :  { %v1196_v38 = vpop.permute.xlu1 %1195 }
 0x185   :  { %v1197_v40 = vsel %vm622_vm3, %v1196_v38, 0 }
 0x186   :  { %v2416_v41 = vand.u32 4294901760, %v1197_v40 }
 0x1a2   :  { %v591_v48 = vpop.f32.mrb[0].mxu0 }
 0x1a3   :  { %v2019_v49 = vadd.f32 %v591_v48, %v148_v46  ;;  %v1831_v50 = vpop.f32.mrb[1].mxu0  ;;  %v1268_v46 = vsub.f32 %v1197_v40, %v2416_v41 }
 0x1a5   :  { %v607_v55 = vmax.f32 %v2019_v49, 0.0 }
 0x1a6   :  { %v597_v57 = vpop.f32.mrb[2].mxu0 }
 0x1a7   :  { %v630_v58 = vand.u32 4294901760, %v607_v55  ;;  %v2021_v59 = vadd.f32 %v597_v57, %v158_v54  ;;  %v1834_v60 = vpop.f32.mrb[3].mxu0 }
 0x1a9   :  { %v729_v3 = vsub.f32 %v607_v55, %v630_v58  ;;  %v608_v4 = vmax.f32 %v2021_v59, 0.0 }
 0x1aa   :  { %v603_v5 = vpop.f32.mrb[4].mxu0 }
 0x1ab   :  { %v730_v6 = vand.u32 4294901760, %v729_v3  ;;  %v633_v2 = vand.u32 4294901760, %v608_v4  ;;  %v2023_v7 = vadd.f32 %v603_v5, %v168_v1  ;;  %v1837_v8 = vpop.f32.mrb[5].mxu0 }
 0x1ad   :  { %v2338_v12 = vpack.c.bf16 %v633_v2, %v630_v58  ;;  %v736_v13 = vsub.f32 %v608_v4, %v633_v2  ;;  %v609_v14 = vmax.f32 %v2023_v7, 0.0  ;;  %v731_v15 = vsub.f32 %v729_v3, %v730_v6 }
 0x1af   :  { %v737_v16 = vand.u32 4294901760, %v736_v13  ;;  %v2340_v17 = vand.u32 4294901760, %v609_v14  ;;  %1984 = vmatpush3.bf16.msra.mxu1 %v2338_v12  ;;  %v1989_v18 = vpack.c.bf16 %v736_v13, %v729_v3  ;;  %v732_v25 = vand.u32 4294901760, %v731_v15 }
 0x1b0   :  { %1842 = vmatprep.subr.mxu1 %v2185_v0 }
 0x1b1   :  { %v738_v22 = vsub.f32 %v736_v13, %v737_v16  ;;  %v743_v23 = vsub.f32 %v609_v14, %v2340_v17  ;;  %v1995_v24 = vpack.c.bf16 %v737_v16, %v730_v6 }
 0x1b3   :  { %v739_v26 = vand.u32 4294901760, %v738_v22  ;;  %v744_v27 = vand.u32 4294901760, %v743_v23  ;;  %1843 = vmatpush3.msra.mxu1 %v2340_v17 }
 0x1b4   :  { %1845 = vmatmul.mubr.f32.vlgmr.msra.gmra.mrb[6].mxu1 %v701_v19  ;;  %1985 = vmatprep.subr.bf16.mxu1 %v2189_v33 }
 0x1b5   :  { %v745_v30 = vsub.f32 %v743_v23, %v744_v27  ;;  %1847 = vmatprep.mubr.msk.f32.mxu1 %vm2186_vm0, %v2185_v0  ;;  %v1986_v31 = vpack.c.bf16 %v739_v26, %v732_v25 }
 0x1b7   :  { %1987 = vmatpush3.bf16.msra.mxu1 %v1986_v31  ;;  %v746_v34 = vand.u32 4294901760, %v745_v30 }
 0x1b8   :  { %1848 = vmatmul.mubr.f32.gmra.mrb[8].mxu1 %v711_v28  ;;  %1857 = vmatprep.subr.mxu1 %v2185_v0 }
 0x1b9   :  { %1850 = vmatprep.mubr.msk.f32.mxu1 %vm2186_vm0, %v2185_v0 }
 0x1bb   :  { %1858 = vmatpush3.msra.mxu1 %v746_v34 }
 0x1bc   :  { %1851 = vmatmul.mubr.f32.gmra.mrb[10].mxu1 %v721_v32  ;;  %1988 = vmatprep.subr.bf16.mxu1 %v2189_v33 }
 0x1bd   :  { %1859 = vmatprep.mubr.msk.f32.mxu1 %vm2186_vm0, %v2185_v0 }
 0x1c0   :  { %1860 = vmatmul.mubr.f32.vlgmr.msra.gmra.mrb[6].mxu1 %v2314_v44 }
 0x1c1   :  { %1990 = vmatpush3.bf16.msra.mxu1 %v1989_v18  ;;  %1862 = vmatprep.mubr.msk.f32.mxu1 %vm2186_vm0, %v2185_v0 }
 0x1c2   :  { %1872 = vmatprep.subr.mxu1 %v2185_v0 }
 0x1c4   :  { %1863 = vmatmul.mubr.f32.gmra.mrb[8].mxu1 %v2321_v52 }
 0x1c5   :  { %1873 = vmatpush3.msra.mxu1 %v743_v23  ;;  %1865 = vmatprep.mubr.msk.f32.mxu1 %vm2186_vm0, %v2185_v0 }
 0x1c6   :  { %1991 = vmatprep.subr.bf16.mxu1 %v2189_v33 }
 0x1c8   :  { %1866 = vmatmul.mubr.f32.gmra.mrb[10].mxu1 %v2326_v62 }
 0x1c9   :  { %1874 = vmatprep.mubr.msk.f32.mxu1 %vm2186_vm0, %v2185_v0 }
 0x1cc   :  { %1875 = vmatmul.mubr.f32.vlgmr.msra.gmra.mrb[6].mxu1 %v2319_v51 }
 0x1cd   :  { %1993 = vmatpush3.bf16.msra.mxu1 %v2338_v12  ;;  %1877 = vmatprep.mubr.msk.f32.mxu1 %vm2186_vm0, %v2185_v0 }
 0x1ce   :  { %1887 = vmatprep.subr.mxu1 %v2185_v0 }
 0x1d0   :  { %1878 = vmatmul.mubr.f32.gmra.mrb[8].mxu1 %v2329_v63 }
 0x1d1   :  { %1888 = vmatpush3.msra.mxu1 %v2340_v17  ;;  %1880 = vmatprep.mubr.msk.f32.mxu1 %vm2186_vm0, %v2185_v0 }
 0x1d2   :  { %1994 = vmatprep.subr.bf16.mxu1 %v2189_v33 }
 0x1d4   :  { %1881 = vmatmul.mubr.f32.gmra.mrb[10].mxu1 %v2332_v9 }
 0x1d5   :  { %1889 = vmatprep.mubr.msk.f32.mxu1 %vm2186_vm0, %v2185_v0 }
 0x1d8   :  { %1890 = vmatmul.mubr.f32.vlgmr.msra.gmra.mrb[6].mxu1 %v699_v61 }
 0x1d9   :  { %1996 = vmatpush3.bf16.msra.mxu1 %v1995_v24  ;;  %1892 = vmatprep.mubr.msk.f32.mxu1 %vm2186_vm0, %v2185_v0 }
 0x1da   :  { %1902 = vmatprep.subr.mxu1 %v2185_v0 }
 0x1dc   :  { %1893 = vmatmul.mubr.f32.gmra.mrb[8].mxu1 %v709_v11 }
 0x1dd   :  { %1903 = vmatpush3.msra.mxu1 %v744_v27  ;;  %1895 = vmatprep.mubr.msk.f32.mxu1 %vm2186_vm0, %v2185_v0 }
 0x1de   :  { %1997 = vmatprep.subr.bf16.mxu1 %v2189_v33 }
 0x1e0   :  { %1896 = vmatmul.mubr.f32.gmra.mrb[10].mxu1 %v719_v21 }
 0x1e1   :  { %1904 = vmatprep.mubr.msk.f32.mxu1 %vm2186_vm0, %v2185_v0 }
 0x1e4   :  { %1905 = vmatmul.mubr.f32.vlgmr.msra.gmra.mrb[6].mxu1 %v2314_v44 }
 0x1e5   :  { %1999 = vmatpush3.bf16.msra.mxu1 %v2338_v12  ;;  %1907 = vmatprep.mubr.msk.f32.mxu1 %vm2186_vm0, %v2185_v0 }
 0x1e6   :  { %1917 = vmatprep.subr.mxu1 %v2185_v0 }
 0x1e8   :  { %1908 = vmatmul.mubr.f32.gmra.mrb[8].mxu1 %v2321_v52 }
 0x1e9   :  { %1918 = vmatpush3.msra.mxu1 %v2340_v17  ;;  %1910 = vmatprep.mubr.msk.f32.mxu1 %vm2186_vm0, %v2185_v0 }
 0x1ea   :  { %2000 = vmatprep.subr.bf16.mxu1 %v2189_v33 }
 0x1ec   :  { %1911 = vmatmul.mubr.f32.gmra.mrb[10].mxu1 %v2326_v62 }
 0x1ed   :  { %1919 = vmatprep.mubr.msk.f32.mxu1 %vm2186_vm0, %v2185_v0 }
 0x1f0   :  { %1920 = vmatmul.mubr.f32.vlgmr.msra.gmra.mrb[6].mxu1 %v2314_v44 }
 0x1f1   :  { %1922 = vmatprep.mubr.msk.f32.mxu1 %vm2186_vm0, %v2185_v0 }
 0x1f4   :  { %1923 = vmatmul.mubr.f32.gmra.mrb[8].mxu1 %v2321_v52  ;;  %v1269_v52 = vand.u32 4294901760, %v1268_v46 }
 0x1f5   :  { %1925 = vmatprep.mubr.msk.f32.mxu1 %vm2186_vm0, %v2185_v0 }
 0x1f6   :  { %v1270_v59 = vsub.f32 %v1268_v46, %v1269_v52 }
 0x1f8   :  { %1926 = vmatmul.mubr.f32.gmra.mrb[10].mxu1 %v2326_v62  ;;  %v1271_v5 = vand.u32 4294901760, %v1270_v59 }
 0x1f9   :  { %1934 = vmatprep.mubr.msk.f32.mxu1 %vm2186_vm0, %v2185_v0 }
 0x1fc   :  { %v1193_v16 = vpop.permute.xlu0 %1192 }
 0x2c3   :  { %v1171_v42 = vpop.f32.mrb[6].mxu1 }
 0x2c4   :  { %v2024_v43 = vadd.f32 %v1171_v42, %v612_v36  ;;  %v1921_v44 = vpop.f32.mrb[7].mxu1 }
 0x2c6   :  { %v1187_v47 = vmax.f32 %v2024_v43, 0.0 }
 0x2c7   :  { %v1177_v48 = vpop.f32.mrb[8].mxu1 }
 0x2c8   :  { %v1200_v49 = vand.u32 4294901760, %v1187_v47  ;;  %v2025_v50 = vadd.f32 %v1177_v48, %v616_v45  ;;  %v1924_v51 = vpop.f32.mrb[9].mxu1 }
 0x2ca   :  { %v1279_v39 = vsub.f32 %v1187_v47, %v1200_v49  ;;  %v1188_v53 = vmax.f32 %v2025_v50, 0.0 }
 0x2cb   :  { %v1183_v54 = vpop.f32.mrb[10].mxu1 }
 0x2cc   :  { %v1280_v55 = vand.u32 4294901760, %v1279_v39  ;;  %v1203_v56 = vand.u32 4294901760, %v1188_v53  ;;  %v2026_v57 = vadd.f32 %v1183_v54, %v620_v37  ;;  %v1927_v58 = vpop.f32.mrb[11].mxu1 }
 0x2ce   :  { %v2001_v60 = vpack.c.bf16 %v1203_v56, %v1200_v49  ;;  %v1286_v61 = vsub.f32 %v1188_v53, %v1203_v56  ;;  %v1189_v62 = vmax.f32 %v2026_v57, 0.0  ;;  %v1281_v63 = vsub.f32 %v1279_v39, %v1280_v55 }
 0x2d0   :  { %v1287_v1 = vand.u32 4294901760, %v1286_v61  ;;  %v1206_v3 = vand.u32 4294901760, %v1189_v62  ;;  %2002 = vmatpush3.bf16.msra.mxu1 %v2001_v60  ;;  %v2007_v4 = vpack.c.bf16 %v1286_v61, %v1279_v39  ;;  %v1282_v8 = vand.u32 4294901760, %v1281_v63 }
 0x2d1   :  { %1932 = vmatprep.subr.mxu1 %v2185_v0 }
 0x2d2   :  { %v1288_v6 = vsub.f32 %v1286_v61, %v1287_v1  ;;  %v1293_v2 = vsub.f32 %v1189_v62, %v1206_v3  ;;  %v2013_v7 = vpack.c.bf16 %v1287_v1, %v1280_v55 }
 0x2d4   :  { %v1289_v9 = vand.u32 4294901760, %v1288_v6  ;;  %v1294_v10 = vand.u32 4294901760, %v1293_v2  ;;  %1933 = vmatpush3.msra.mxu1 %v1206_v3 }
 0x2d5   :  { %1935 = vmatmul.mubr.f32.vlgmr.msra.gmra.mrb[12].mxu1 %v1271_v5 }
 0x2d6   :  { %v1295_v11 = vsub.f32 %v1293_v2, %v1294_v10  ;;  %v2004_v12 = vpack.c.bf16 %v1289_v9, %v1282_v8 }
 0x2d8   :  { %2005 = vmatpush3.bf16.msra.mxu0 %v2004_v12  ;;  %v1296_v13 = vand.u32 4294901760, %v1295_v11 }
 0x2d9   :  { %1941 = vmatprep.subr.mxu0 %v2185_v0 }
 0x2dc   :  { %1942 = vmatpush3.msra.mxu0 %v1296_v13 }
 0x2dd   :  { %1944 = vmatmul.mubr.f32.vlgmr.msra.gmra.mrb[6].mxu0 %v2416_v41  ;;  %2006 = vmatprep.subr.bf16.mxu0 %v2189_v33 }
 0x2de   :  { %2008 = vmatpush3.bf16.msra.mxu0 %v2007_v4  ;;  %1952 = vmatprep.mubr.msk.f32.mxu0 %vm2186_vm0, %v2185_v0 }
 0x2df   :  { %1950 = vmatprep.subr.mxu0 %v2185_v0 }
 0x2e2   :  { %1951 = vmatpush3.msra.mxu0 %v1293_v2 }
 0x2e3   :  { %2009 = vmatprep.subr.bf16.mxu0 %v2189_v33 }
 0x2e5   :  { %1953 = vmatmul.mubr.f32.vlgmr.msra.gmra.mrb[6].mxu0 %v1268_v46 }
 0x2e6   :  { %2011 = vmatpush3.bf16.msra.mxu0 %v2001_v60  ;;  %1961 = vmatprep.mubr.msk.f32.mxu0 %vm2186_vm0, %v2185_v0 }
 0x2e7   :  { %1959 = vmatprep.subr.mxu0 %v2185_v0 }
 0x2ea   :  { %1960 = vmatpush3.msra.mxu0 %v1206_v3 }
 0x2eb   :  { %2012 = vmatprep.subr.bf16.mxu0 %v2189_v33 }
 0x2ed   :  { %1962 = vmatmul.mubr.f32.vlgmr.msra.gmra.mrb[6].mxu0 %v1269_v52 }
 0x2ee   :  { %2014 = vmatpush3.bf16.msra.mxu0 %v2013_v7  ;;  %1970 = vmatprep.mubr.msk.f32.mxu0 %vm2186_vm0, %v2185_v0 }
 0x2ef   :  { %1968 = vmatprep.subr.mxu0 %v2185_v0 }
 0x2f2   :  { %1969 = vmatpush3.msra.mxu0 %v1294_v10 }
 0x2f3   :  { %2015 = vmatprep.subr.bf16.mxu0 %v2189_v33 }
 0x2f5   :  { %1971 = vmatmul.mubr.f32.vlgmr.msra.gmra.mrb[6].mxu0 %v2416_v41 }
 0x2f6   :  { %2017 = vmatpush3.bf16.msra.mxu0 %v2001_v60  ;;  %1979 = vmatprep.mubr.msk.f32.mxu0 %vm2186_vm0, %v2185_v0 }
 0x2f7   :  { %1977 = vmatprep.subr.mxu0 %v2185_v0 }
 0x2fa   :  { %1978 = vmatpush3.msra.mxu0 %v1206_v3 }
 0x2fd   :  { %1980 = vmatmul.mubr.f32.vlgmr.msra.gmra.mrb[6].mxu0 %v2416_v41 }
 0x3a8   :  { %v1273_v14 = vpop.f32.mrb[12].mxu1 }
 0x3a9   :  { %v1936_v15 = vpop.f32.mrb[13].mxu1  ;;  %v1274_v17 = vadd.f32 %v1273_v14, %v1193_v16 }
 0x3d0   :  { %v1667_v18 = vpop.f32.mrb[6].mxu0 }
 0x3d1   :  { %v2028_v19 = vadd.f32 %v1667_v18, %v1274_v17  ;;  %v1981_v33 = vpop.f32.mrb[7].mxu0 }
 0x3d3   :  { %1671 = vst [vmem:[#allocation7] sm:$0x3] %v2028_v19 }
 0x3d4   :  { %2164 = shalt.err (!%p2161_p6)
}
 0x3d5   :  { %s2165_s12 = scalar_lea.hbm %s2454_s2, 32 }
 0x3d6   :  { %p2166_p7 = scmp.ne.s32.totalorder %s2454_s2, %s2165_s12  ;;  %p2169_p8 = scmp.lt.u32.totalorder %s2165_s12, %s2454_s2 }
 0x3d8   :  { %p2171_p9 = pnand %p2169_p8, %p2166_p7 }
 0x3da   :  { %2174 = shalt.err (!%p2171_p9)
}
 0x3db   :  { %1681 = dma.vmem_to_hbm [thread:$0]  %s1679_s8, 32, %s2454_s2, [#allocation4]  }
 0x3dc   :  { %2179 = dma.done.wait [#allocation4], 32  }
 0x3dd   :  { %2180 = vsyncadd [#allocation4], 4294967264 }
 0x3de   :  { %1685 = vsyncpa [#allocation3], 1 }
 0x3df   :  { %1686 = vsyncpa [#allocation6], 1 }
 0x3e0   :  { %1687 = vsyncpa [#allocation4], 1 }

</bundles_post_ra>
